<compile_context>
chip_gen: v5e
topology: v5e:2x2
jax: 0.10.0
libtpu: 0.0.40
codegen_flags: <defaults>
</compile_context>

<pallas_src>
import functools
import math

import jax
import jax.numpy as jnp
from jax.experimental import pallas as pl
from jax.experimental.pallas import tpu as pltpu

LANES = 128
SUBLANES = 8
MAX_BLOCK_R = 1024     # rows per grid step (1024x128 f32 tile = 512 KiB)
NUM_SPLITS = 2         # leading "parallel" grid axis (2 TCs on v7x)
EPS = 1e-5
PAD_LOGIT = -1e4       # sigmoid(-1e4) == 0 in f32 -> padding adds nothing


def _dice_kernel(p_ref, t_ref, inter_ref, union_ref):
    """Accumulate per-lane partial sums for one (block_r, 128) tile.

    p_ref, t_ref         : (block_r, 128) VMEM input tiles (native dtype)
    inter_ref, union_ref : (8, 128) f32 VMEM output accumulators, resident
                           across the inner ("arbitrary") grid axis.
    """
    i = pl.program_id(1)

    @pl.when(i == 0)
    def _():
        inter_ref[...] = jnp.zeros_like(inter_ref)
        union_ref[...] = jnp.zeros_like(union_ref)

    pre = jax.nn.sigmoid(p_ref[...].astype(jnp.float32))
    tar = t_ref[...].astype(jnp.float32)

    # Reduce (block_r, 128) -> (8, 128) by summing whole vregs along the
    # leading axis: pure VPU adds each step, no per-step cross-lane work.
    inter_ref[...] += (pre * tar).reshape(-1, SUBLANES, LANES).sum(axis=0)
    union_ref[...] += (pre + tar).reshape(-1, SUBLANES, LANES).sum(axis=0)


def _round_up(x, m):
    return ((x + m - 1) // m) * m


@jax.jit
def dice_loss(predict, target):
    assert predict.shape == target.shape, \
        "the size of predict and target must be equal."

    total = math.prod(predict.shape)

    # Tiling: flatten to a lane-dense (rows, 128) slab.  block_r adapts to
    # the input size (multiple of 8, capped at MAX_BLOCK_R) so tiny inputs
    # get minimal padding while large inputs get big, roofline-friendly tiles.
    rows_min = -(-total // LANES)
    block_r = min(MAX_BLOCK_R,
                  _round_up(-(-rows_min // NUM_SPLITS), SUBLANES))
    rows = _round_up(rows_min, NUM_SPLITS * block_r)
    steps_per_split = rows // (NUM_SPLITS * block_r)
    padded_total = rows * LANES
    pad = padded_total - total

    # No mask stream, no f32 materialization in the wrapper: keep native
    # dtype, pad predict with a large negative logit and target with zero.
    def to_slab(x, pad_value):
        flat = jnp.ravel(x)
        if pad:
            flat = jnp.pad(flat, (0, pad), constant_values=pad_value)
        return flat.reshape(rows, LANES)

    p2 = to_slab(predict, PAD_LOGIT)
    t2 = to_slab(target, 0)

    in_spec = pl.BlockSpec((block_r, LANES),
                           lambda s, i: (s * steps_per_split + i, 0))
    out_spec = pl.BlockSpec((SUBLANES, LANES), lambda s, i: (s, 0))

    inter_p, union_p = pl.pallas_call(
        _dice_kernel,
        out_shape=(
            jax.ShapeDtypeStruct((NUM_SPLITS * SUBLANES, LANES), jnp.float32),
            jax.ShapeDtypeStruct((NUM_SPLITS * SUBLANES, LANES), jnp.float32),
        ),
        grid_spec=pltpu.PrefetchScalarGridSpec(
            num_scalar_prefetch=0,
            grid=(NUM_SPLITS, steps_per_split),
            in_specs=[in_spec, in_spec],
            out_specs=(out_spec, out_spec),
        ),
        compiler_params=pltpu.CompilerParams(
            dimension_semantics=("parallel", "arbitrary")),
    )(p2, t2)

    # Single cross-lane reduction + final scalar math, once, outside the
    # kernel (also combines the per-TensorCore partials).
    intersection = jnp.sum(inter_p)
    union = jnp.sum(union_p)
    return 1.0 - 2.0 * (intersection + EPS) / (union + EPS)


def _reference_dice_loss(predict, target):
    num = predict.shape[0]
    pre = jax.nn.sigmoid(predict.astype(jnp.float32)).reshape(num, -1)
    tar = target.astype(jnp.float32).reshape(num, -1)
    intersection = (pre * tar).sum(-1).sum()
    union = (pre + tar).sum(-1).sum()
    return 1.0 - 2.0 * (intersection + EPS) / (union + EPS)


if __name__ == "__main__":
    key = jax.random.PRNGKey(0)
    k1, k2 = jax.random.split(key)
    # NCHW, small shapes: batch=2, channels=4, spatial=16x16
    predict = jax.random.normal(k1, (2, 4, 16, 16), dtype=jnp.float32)
    target = (jax.random.uniform(k2, (2, 4, 16, 16)) > 0.5).astype(jnp.float32)

    score = dice_loss(predict, target)
    jax.block_until_ready(score)

    ref = _reference_dice_loss(predict, target)
    assert jnp.allclose(score, ref, atol=1e-5, rtol=1e-5), (score, ref)

    print("KERNEL_OK")
</pallas_src>

<mosaic_0001>
module attributes {stable_mosaic.version = 11 : i64} {
  func.func @_dice_kernel(%arg0: i32, %arg1: i32, %arg2: memref<8x128xf32, #tpu.memory_space<vmem>>, %arg3: memref<8x128xf32, #tpu.memory_space<vmem>>, %arg4: memref<8x128xf32, #tpu.memory_space<vmem>>, %arg5: memref<8x128xf32, #tpu.memory_space<vmem>>) attributes {dimension_semantics = [#tpu.dimension_semantics<parallel>, #tpu.dimension_semantics<arbitrary>], iteration_bounds = array<i64: 2, 1>, scalar_prefetch = 0 : i64, scratch_operands = 0 : i64, tpu.core_type = #tpu.core_type<tc>, window_params = [{transform_indices = @transform_0, window_bounds = array<i64: 8, 128>}, {transform_indices = @transform_1, window_bounds = array<i64: 8, 128>}, {transform_indices = @transform_2, window_bounds = array<i64: 8, 128>}, {transform_indices = @transform_3, window_bounds = array<i64: 8, 128>}]} {
    %c0_i32 = arith.constant 0 : i32
    %0 = arith.cmpi eq, %arg1, %c0_i32 : i32
    %1 = arith.extui %0 : i1 to i32
    %c0_i32_0 = arith.constant 0 : i32
    %2 = arith.cmpi ne, %1, %c0_i32_0 : i32
    scf.if %2 {
      %cst_14 = arith.constant 0.000000e+00 : f32
      %22 = vector.broadcast %cst_14 : f32 to vector<8x128xf32>
      %c0_15 = arith.constant 0 : index
      %c0_16 = arith.constant 0 : index
      %23 = vector.load %arg4[%c0_15, %c0_16] : memref<8x128xf32, #tpu.memory_space<vmem>>, vector<8x128xf32>
      tpu.vector_store %arg4[%c0_15, %c0_16], %22 {strides = array<i32>} : memref<8x128xf32, #tpu.memory_space<vmem>>, vector<8x128xf32>,
      %cst_17 = arith.constant 0.000000e+00 : f32
      %24 = vector.broadcast %cst_17 : f32 to vector<8x128xf32>
      %c0_18 = arith.constant 0 : index
      %c0_19 = arith.constant 0 : index
      %25 = vector.load %arg5[%c0_18, %c0_19] : memref<8x128xf32, #tpu.memory_space<vmem>>, vector<8x128xf32>
      tpu.vector_store %arg5[%c0_18, %c0_19], %24 {strides = array<i32>} : memref<8x128xf32, #tpu.memory_space<vmem>>, vector<8x128xf32>,
    } else {
    }
    %c0 = arith.constant 0 : index
    %c0_1 = arith.constant 0 : index
    %3 = vector.load %arg2[%c0, %c0_1] : memref<8x128xf32, #tpu.memory_space<vmem>>, vector<8x128xf32>
    %4 = arith.negf %3 : vector<8x128xf32>
    %5 = math.exp %4 : vector<8x128xf32>
    %cst = arith.constant 1.000000e+00 : f32
    %6 = vector.broadcast %cst : f32 to vector<8x128xf32>
    %7 = arith.addf %6, %5 : vector<8x128xf32>
    %8 = arith.divf %6, %7 : vector<8x128xf32>
    %c0_2 = arith.constant 0 : index
    %c0_3 = arith.constant 0 : index
    %9 = vector.load %arg3[%c0_2, %c0_3] : memref<8x128xf32, #tpu.memory_space<vmem>>, vector<8x128xf32>
    %c0_4 = arith.constant 0 : index
    %c0_5 = arith.constant 0 : index
    %10 = vector.load %arg4[%c0_4, %c0_5] : memref<8x128xf32, #tpu.memory_space<vmem>>, vector<8x128xf32>
    %11 = arith.mulf %8, %9 : vector<8x128xf32>
    %12 = vector.shape_cast %11 : vector<8x128xf32> to vector<1x8x128xf32>
    %cst_6 = arith.constant dense<0.000000e+00> : vector<8x128xf32>
    %13 = vector.multi_reduction <add>, %12, %cst_6 [0] : vector<1x8x128xf32> to vector<8x128xf32>
    %14 = arith.addf %10, %13 : vector<8x128xf32>
    %c0_7 = arith.constant 0 : index
    %c0_8 = arith.constant 0 : index
    %15 = vector.load %arg4[%c0_7, %c0_8] : memref<8x128xf32, #tpu.memory_space<vmem>>, vector<8x128xf32>
    tpu.vector_store %arg4[%c0_7, %c0_8], %14 {strides = array<i32>} : memref<8x128xf32, #tpu.memory_space<vmem>>, vector<8x128xf32>,
    %c0_9 = arith.constant 0 : index
    %c0_10 = arith.constant 0 : index
    %16 = vector.load %arg5[%c0_9, %c0_10] : memref<8x128xf32, #tpu.memory_space<vmem>>, vector<8x128xf32>
    %17 = arith.addf %8, %9 : vector<8x128xf32>
    %18 = vector.shape_cast %17 : vector<8x128xf32> to vector<1x8x128xf32>
    %cst_11 = arith.constant dense<0.000000e+00> : vector<8x128xf32>
    %19 = vector.multi_reduction <add>, %18, %cst_11 [0] : vector<1x8x128xf32> to vector<8x128xf32>
    %20 = arith.addf %16, %19 : vector<8x128xf32>
    %c0_12 = arith.constant 0 : index
    %c0_13 = arith.constant 0 : index
    %21 = vector.load %arg5[%c0_12, %c0_13] : memref<8x128xf32, #tpu.memory_space<vmem>>, vector<8x128xf32>
    tpu.vector_store %arg5[%c0_12, %c0_13], %20 {strides = array<i32>} : memref<8x128xf32, #tpu.memory_space<vmem>>, vector<8x128xf32>,
    return
  }
  func.func @transform_0(%arg0: i32, %arg1: i32) -> (i32, i32) {
    %c1_i32 = arith.constant 1 : i32
    %0 = arith.muli %arg0, %c1_i32 : i32
    %1 = arith.addi %0, %arg1 : i32
    %c0_i32 = arith.constant 0 : i32
    %c0_i32_0 = arith.constant 0 : i32
    return %1, %c0_i32 : i32, i32
  }
  func.func @transform_1(%arg0: i32, %arg1: i32) -> (i32, i32) {
    %c1_i32 = arith.constant 1 : i32
    %0 = arith.muli %arg0, %c1_i32 : i32
    %1 = arith.addi %0, %arg1 : i32
    %c0_i32 = arith.constant 0 : i32
    %c0_i32_0 = arith.constant 0 : i32
    return %1, %c0_i32 : i32, i32
  }
  func.func @transform_2(%arg0: i32, %arg1: i32) -> (i32, i32) {
    %c0_i32 = arith.constant 0 : i32
    %c0_i32_0 = arith.constant 0 : i32
    return %arg0, %c0_i32 : i32, i32
  }
  func.func @transform_3(%arg0: i32, %arg1: i32) -> (i32, i32) {
    %c0_i32 = arith.constant 0 : i32
    %c0_i32_0 = arith.constant 0 : i32
    return %arg0, %c0_i32 : i32, i32
  }
}

</mosaic_0001>

<bundles_post_ra>
// kernel: dice_loss.1
= control target key start
LH: loop header
LB: loop body
LE: loop exit
PB: predicated region body
PF: predicated region fallthrough
CT: control target
= control target key end

     0   :  { %s446_s12 = smov 0   ;;  %s448_s13 = smov 0   ;;  %s491_s0 = inlined_call_operand.vmem [shape: f32[16,128], index: 0, kind: input, shape index: {}]   ;;  %s492_s1 = inlined_call_operand.vmem [shape: f32[16,128], index: 1, kind: input, shape index: {}]   ;;  %s493_s2 = inlined_call_operand.vmem [shape: f32[16,128], index: 2, kind: output, shape index: {0}]   ;;  %s494_s3 = inlined_call_operand.vmem [shape: f32[16,128], index: 3, kind: output, shape index: {1}]  }
   0x1   :  { %s450_s14 = smov 0  }
   0x2 LB: > { %s26_s15 = sadd.s32 1, %s420_s13  ;;  %p365_p0 = scmp.ge.s32.totalorder %s424_s14, 1  ;;  %s424_s14 = sphi %s450_s14, %s14_s14   ;;  %s420_s13 = sphi %s448_s13, %s496_s13   ;;  %s416_s12 = sphi %s446_s12, %s495_s12  }
   0x3   : > { %p28_p1 = scmp.ge.s32.totalorder %s26_s15, 2  ;;  %p168_p2 = scmp.lt.s32.totalorder %s424_s14, 3 }
   0x5   : > { %s498_s15 = smov (%p28_p1, %s26_s15), 0  ;;  %p169_p3 = pnand %p365_p0, %p168_p2 }
   0x6   : > { %p201_p4 = scmp.lt.s32.totalorder (!%p169_p3), %s416_s12, 1 }
   0x7   : > { %172 = sbr.rel (%p169_p3) target bundleno = 48 (0x30), region = 28 }
   0xc   : > { %s500_s12 = smov (!%p201_p4, %s416_s12), 1 }
   0xd   : > { %s464_s16 = sshll.u32 %s500_s12, 3 }
   0xe   : > { %s204_s19 = scalar_lea.vmem %s491_s0, %s464_s16  ;;  %s210_s22 = scalar_lea.vmem %s492_s1, %s464_s16 }
   0xf   : > { %v226_v0 = vld [vmem:[%s204_s19] sm:$0xff]  ;;  %s215_s25 = scalar_lea.vmem %s493_s2, %s464_s16  ;;  %s219_s28 = scalar_lea.vmem %s494_s3, %s464_s16 }
  0x10   : > { %v370_v1 = vmul.f32 -1.442695, %v226_v0  ;;  %v246_v12 = vld [vmem:[%s210_s22] sm:$0xff] }
  0x12   : > { %398 = vpow2.f32 %v370_v1 }
  0x18   : > { %v399_v2 = vpop.eup %398 }
  0x19   : > { %v230_v3 = vadd.f32 1.0, %v399_v2 }
  0x1b   : > { %400 = vrcp.f32 %v230_v3  ;;  %v242_v6 = vand.u32 2147483648, %v230_v3  ;;  %vm236_vm0 = vweird.f32 %v230_v3  ;;  %v240_v8 = vand.u32 2147483647, %v230_v3 }
  0x1d   : > { %v243_v10 = vor.u32 1.1754944e-38, %v242_v6  ;;  %vm241_vm3 = vcmp.eq.f32.partialorder %v240_v8, 8.507059e+37 }
  0x21   : > { %v401_v4 = vpop.eup %400 }
  0x22   : > { %v232_v5 = vmul.f32 %v401_v4, %v230_v3  ;;  %vm237_vm1 = vweird.f32 %v401_v4 }
  0x23   : > { %vm238_vm2 = vmor %vm236_vm0, %vm237_vm1 }
  0x24   : > { %v233_v7 = vsub.f32 1.0, %v232_v5 }
  0x26   : > { %v234_v9 = vmul.f32 %v401_v4, %v233_v7 }
  0x28   : > { %v235_v11 = vadd.f32 %v401_v4, %v234_v9 }
  0x2a   : > { %v239_v13 = vsel %vm238_vm2, %v401_v4, %v235_v11 }
  0x2b   : > { %v244_v14 = vsel %vm241_vm3, %v243_v10, %v239_v13 }
  0x2c   : > { %v248_v15 = vmul.f32 %v246_v12, %v244_v14  ;;  %v253_v16 = vadd.f32 %v246_v12, %v244_v14 }
  0x2e   : > { %251 = vst [vmem:[%s215_s25] sm:$0xff] %v248_v15 }
  0x2f   : > { %256 = vst [vmem:[%s219_s28] sm:$0xff] %v253_v16 }
  0x30 PF: > { %s14_s14 = sadd.s32 1, %s424_s14   ;;  %s495_s12 = smov %s420_s13 }
  0x31   : > { %p11_p5 = scmp.ge.s32.totalorder %s14_s14, 4   ;;  %s496_s13 = smov %s498_s15 }
  0x33   :  { %13 = sbr.rel (!%p11_p5) target bundleno = 2 (0x2), region = 77 }

</bundles_post_ra>
